<compile_context>
chip_gen: v5e
topology: v5e:2x2
jax: 0.10.0
libtpu: 0.0.40
codegen_flags: <defaults>
</compile_context>

<pallas_src>
import jax
import jax.numpy as jnp
from jax import lax
from jax.experimental import pallas as pl
from jax.experimental.pallas import tpu as pltpu


# ----------------------------- glue (plain JAX) ------------------------------

def posemb_sincos_1d(n, dim, temperature=10000.0, dtype=jnp.float32):
    """Matches the PyTorch posemb_sincos_1d: returns (n, dim) = [sin | cos]."""
    assert dim % 2 == 0, "feature dimension must be multiple of 2 for sincos emb"
    pos = jnp.arange(n, dtype=jnp.float32)
    omega = jnp.arange(dim // 2, dtype=jnp.float32) / (dim // 2 - 1)
    omega = 1.0 / (temperature ** omega)
    angles = pos[:, None] * omega[None, :]                                # (n, dim//2)
    pe = jnp.concatenate([jnp.sin(angles), jnp.cos(angles)], axis=1)      # (n, dim)
    return pe.astype(dtype)


# ------------------------------- Pallas kernel -------------------------------

def _make_dabstractor_kernel(B, S, D, H, Dh, eps=1e-6):
    N = B * S          # flattened (batch, seq) rows
    G = H * B          # packed (head, batch) attention batch dim
    NEG_INF = -1e30

    def kernel(x_ref, pe_ref, wq_ref, wk_ref, wv_ref, wo_ref,
               qs_ref, ks_ref, o_ref):
        # (1) x += positional embedding (f32, VPU); pe broadcasts over batch.
        x = x_ref[...] + pe_ref[...]                                      # (B, S, D)
        # (2) AdaptiveAvgPool1d(D) over a length-D last dim == identity (no-op).

        # Flatten batch into sublanes; cast once to bf16 for the MXU.
        xb = x.astype(jnp.bfloat16).reshape(N, D)                         # (N, D)
        xh = jnp.broadcast_to(xb[None], (H, N, D))                        # (H, N, D)

        # (3) QKV projections: one head-batched MXU matmul each (f32 accum).
        q = jnp.einsum('hnd,hde->hne', xh, wq_ref[...],
                       preferred_element_type=jnp.float32)                # (H, N, Dh)
        k = jnp.einsum('hnd,hde->hne', xh, wk_ref[...],
                       preferred_element_type=jnp.float32)
        v = jnp.einsum('hnd,hde->hne', xh, wv_ref[...],
                       preferred_element_type=jnp.float32)

        # qk-norm in f32: L2 normalize over head dim + learned per-dim scale.
        # (matches torch F.normalize's 1/max(||x||, eps) via max on the sumsq;
        #  the softmax scale is pre-folded into qs_ref in the wrapper.)
        def _qk_norm(t, scale):
            ssq = jnp.sum(t * t, axis=-1, keepdims=True)                  # XLU reduce
            inv = lax.rsqrt(jnp.maximum(ssq, eps * eps))                  # EUP rsqrt
            return t * inv * scale                                        # scale: (H,1,Dh)

        q = _qk_norm(q, qs_ref[...])
        k = _qk_norm(k, ks_ref[...])

        # Pack (head, batch) into one batch dim g = h*B + b; seq stays on
        # sublanes, head dim on lanes. Reshapes keep the minor dim fixed.
        qg = q.reshape(G, S, Dh).astype(jnp.bfloat16)
        kg = k.reshape(G, S, Dh).astype(jnp.bfloat16)
        vg = v.reshape(G, S, Dh).astype(jnp.bfloat16)

        # Logits: contraction folded into dot_general (no kh.T materialized).
        # Softmax scale already lives inside q, so no (G,S,S) multiply here.
        logits = jnp.einsum('gsd,gtd->gst', qg, kg,
                            preferred_element_type=jnp.float32)           # (G, S, S)

        row = lax.broadcasted_iota(jnp.int32, (S, S), 0)
        col = lax.broadcasted_iota(jnp.int32, (S, S), 1)
        causal = (row >= col)[None]                                       # (1, S, S)
        logits = jnp.where(causal, logits, NEG_INF)

        # Numerically stable softmax in f32; divide via EUP reciprocal.
        m = jnp.max(logits, axis=-1, keepdims=True)
        p = jnp.exp(logits - m)
        attn = p * pl.reciprocal(jnp.sum(p, axis=-1, keepdims=True), approx=True)

        outg = jnp.einsum('gst,gtd->gsd', attn.astype(jnp.bfloat16), vg,
                          preferred_element_type=jnp.float32)             # (G, S, Dh)

        # Output projection with NO lane-axis concat: per-head matmul with the
        # corresponding Wo row-block, then sum over heads (tile-wise adds).
        oh = outg.reshape(H, N, Dh).astype(jnp.bfloat16)                  # (H, N, Dh)
        proj = jnp.einsum('hne,hed->hnd', oh, wo_ref[...],
                          preferred_element_type=jnp.float32)             # (H, N, D)
        o_ref[...] = jnp.sum(proj, axis=0).reshape(B, S, D).astype(o_ref.dtype)

    return kernel


def dabstractor_forward(x, params, *, heads, dim_head):
    """x: (B, S, D) float32 -> (B, S, D) float32."""
    B, S, D = x.shape
    H, Dh = heads, dim_head
    pe = posemb_sincos_1d(S, D, dtype=jnp.float32)                        # (S, D)
    softmax_scale = 1.0 / (dim_head ** 0.5)

    # Layout plumbing in plain JAX (done once): split weights per head and cast
    # to bf16 so the kernel never slices along lanes and DMA bytes are halved.
    wq = params["wq"].reshape(D, H, Dh).transpose(1, 0, 2).astype(jnp.bfloat16)  # (H, D, Dh)
    wk = params["wk"].reshape(D, H, Dh).transpose(1, 0, 2).astype(jnp.bfloat16)
    wv = params["wv"].reshape(D, H, Dh).transpose(1, 0, 2).astype(jnp.bfloat16)
    wo = params["wo"].reshape(H, Dh, D).astype(jnp.bfloat16)                     # (H, Dh, D)
    # Fold the softmax scale into the learned q scale (hoisted, applied once to
    # a (H,1,Dh) tensor instead of the (G,S,S) logits inside the kernel).
    qs = (params["q_scale"] * softmax_scale).reshape(H, 1, Dh).astype(jnp.float32)
    ks = params["k_scale"].reshape(H, 1, Dh).astype(jnp.float32)

    kernel = _make_dabstractor_kernel(B, S, D, H, Dh)

    vmem = lambda: pl.BlockSpec(memory_space=pltpu.MemorySpace.VMEM)

    # Single grid-less invocation: the whole (tiny) problem lives in VMEM, so
    # there is no per-batch pipeline overhead and no double-buffered weights.
    return pl.pallas_call(
        kernel,
        out_shape=jax.ShapeDtypeStruct((B, S, D), jnp.float32),
        in_specs=[vmem() for _ in range(8)],
        out_specs=vmem(),
    )(x.astype(jnp.float32), pe, wq, wk, wv, wo, qs, ks)


# -------------------------- deterministic parameters --------------------------

def init_params(key, dim, heads, dim_head):
    inner = heads * dim_head
    k_q, k_k, k_v, k_o = jax.random.split(key, 4)
    std = 0.02
    return {
        "wq": std * jax.random.normal(k_q, (dim, inner), jnp.float32),
        "wk": std * jax.random.normal(k_k, (dim, inner), jnp.float32),
        "wv": std * jax.random.normal(k_v, (dim, inner), jnp.float32),
        "wo": std * jax.random.normal(k_o, (inner, dim), jnp.float32),
        "q_scale": jnp.ones((heads, dim_head), jnp.float32),
        "k_scale": jnp.ones((heads, dim_head), jnp.float32),
    }


# ------------------------------------ main ------------------------------------

if __name__ == "__main__":
    B, S, D = 2, 8, 32          # batch, seq, dim
    HEADS, DIM_HEAD = 2, 32     # attention config (depth/dropout unused in forward)

    key = jax.random.PRNGKey(0)
    k_x, k_p = jax.random.split(key)
    x = jax.random.normal(k_x, (B, S, D), jnp.float32)
    params = init_params(k_p, D, HEADS, DIM_HEAD)

    out = dabstractor_forward(x, params, heads=HEADS, dim_head=DIM_HEAD)
    out = jax.block_until_ready(out)

    assert out.shape == (B, S, D)
    assert jnp.all(jnp.isfinite(out))
    print("KERNEL_OK")
</pallas_src>

<mosaic_0001>
module attributes {stable_mosaic.version = 11 : i64} {
  func.func @kernel(%arg0: memref<2x8x32xf32, #tpu.memory_space<vmem>>, %arg1: memref<8x32xf32, #tpu.memory_space<vmem>>, %arg2: memref<2x32x32xbf16, #tpu.memory_space<vmem>>, %arg3: memref<2x32x32xbf16, #tpu.memory_space<vmem>>, %arg4: memref<2x32x32xbf16, #tpu.memory_space<vmem>>, %arg5: memref<2x32x32xbf16, #tpu.memory_space<vmem>>, %arg6: memref<2x1x32xf32, #tpu.memory_space<vmem>>, %arg7: memref<2x1x32xf32, #tpu.memory_space<vmem>>, %arg8: memref<2x8x32xf32, #tpu.memory_space<vmem>>) attributes {dimension_semantics = [], scalar_prefetch = 0 : i64, scratch_operands = 0 : i64, tpu.core_type = #tpu.core_type<tc>} {
    %c0 = arith.constant 0 : index
    %c0_0 = arith.constant 0 : index
    %c0_1 = arith.constant 0 : index
    %0 = vector.load %arg0[%c0, %c0_0, %c0_1] : memref<2x8x32xf32, #tpu.memory_space<vmem>>, vector<2x8x32xf32>
    %c0_2 = arith.constant 0 : index
    %c0_3 = arith.constant 0 : index
    %1 = vector.load %arg1[%c0_2, %c0_3] : memref<8x32xf32, #tpu.memory_space<vmem>>, vector<8x32xf32>
    %2 = vector.shape_cast %1 : vector<8x32xf32> to vector<1x8x32xf32>
    %3 = vector.broadcast %2 : vector<1x8x32xf32> to vector<2x8x32xf32>
    %4 = arith.addf %0, %3 : vector<2x8x32xf32>
    %5 = arith.truncf %4 : vector<2x8x32xf32> to vector<2x8x32xbf16>
    %6 = vector.shape_cast %5 : vector<2x8x32xbf16> to vector<16x32xbf16>
    %7 = vector.shape_cast %6 : vector<16x32xbf16> to vector<1x16x32xbf16>
    %8 = vector.shape_cast %7 : vector<1x16x32xbf16> to vector<1x16x32xbf16>
    %9 = vector.broadcast %8 : vector<1x16x32xbf16> to vector<2x16x32xbf16>
    %c0_4 = arith.constant 0 : index
    %c0_5 = arith.constant 0 : index
    %c0_6 = arith.constant 0 : index
    %10 = vector.load %arg2[%c0_4, %c0_5, %c0_6] : memref<2x32x32xbf16, #tpu.memory_space<vmem>>, vector<2x32x32xbf16>
    "tpu.trace_start"() <{level = 10 : i32, message = "hnd,hde->hne"}> : () -> ()
    %cst = arith.constant dense<0.000000e+00> : vector<2x16x32xf32>
    %11 = tpu.matmul %9, %10, %cst {dimension_numbers = #tpu.dot_dimension_numbers<[2], [1], [1], [2], [0, 0, 0, 1, 1, 2], [0], [0]>} : vector<2x16x32xbf16>, vector<2x32x32xbf16>, vector<2x16x32xf32> -> vector<2x16x32xf32>
    "tpu.trace_stop"() : () -> ()
    %c0_7 = arith.constant 0 : index
    %c0_8 = arith.constant 0 : index
    %c0_9 = arith.constant 0 : index
    %12 = vector.load %arg3[%c0_7, %c0_8, %c0_9] : memref<2x32x32xbf16, #tpu.memory_space<vmem>>, vector<2x32x32xbf16>
    "tpu.trace_start"() <{level = 10 : i32, message = "hnd,hde->hne"}> : () -> ()
    %cst_10 = arith.constant dense<0.000000e+00> : vector<2x16x32xf32>
    %13 = tpu.matmul %9, %12, %cst_10 {dimension_numbers = #tpu.dot_dimension_numbers<[2], [1], [1], [2], [0, 0, 0, 1, 1, 2], [0], [0]>} : vector<2x16x32xbf16>, vector<2x32x32xbf16>, vector<2x16x32xf32> -> vector<2x16x32xf32>
    "tpu.trace_stop"() : () -> ()
    %c0_11 = arith.constant 0 : index
    %c0_12 = arith.constant 0 : index
    %c0_13 = arith.constant 0 : index
    %14 = vector.load %arg4[%c0_11, %c0_12, %c0_13] : memref<2x32x32xbf16, #tpu.memory_space<vmem>>, vector<2x32x32xbf16>
    "tpu.trace_start"() <{level = 10 : i32, message = "hnd,hde->hne"}> : () -> ()
    %cst_14 = arith.constant dense<0.000000e+00> : vector<2x16x32xf32>
    %15 = tpu.matmul %9, %14, %cst_14 {dimension_numbers = #tpu.dot_dimension_numbers<[2], [1], [1], [2], [0, 0, 0, 1, 1, 2], [0], [0]>} : vector<2x16x32xbf16>, vector<2x32x32xbf16>, vector<2x16x32xf32> -> vector<2x16x32xf32>
    "tpu.trace_stop"() : () -> ()
    %c0_15 = arith.constant 0 : index
    %c0_16 = arith.constant 0 : index
    %c0_17 = arith.constant 0 : index
    %16 = vector.load %arg6[%c0_15, %c0_16, %c0_17] : memref<2x1x32xf32, #tpu.memory_space<vmem>>, vector<2x1x32xf32>
    %17 = arith.mulf %11, %11 : vector<2x16x32xf32>
    %cst_18 = arith.constant dense<0.000000e+00> : vector<2x16xf32>
    %18 = vector.multi_reduction <add>, %17, %cst_18 [2] : vector<2x16x32xf32> to vector<2x16xf32>
    %19 = vector.shape_cast %18 : vector<2x16xf32> to vector<2x16x1xf32>
    %cst_19 = arith.constant 9.99999996E-13 : f32
    %20 = vector.broadcast %cst_19 : f32 to vector<2x16x1xf32>
    %21 = arith.maximumf %19, %20 : vector<2x16x1xf32>
    %22 = math.rsqrt %21 : vector<2x16x1xf32>
    %23 = vector.broadcast %22 : vector<2x16x1xf32> to vector<2x16x32xf32>
    %24 = arith.mulf %11, %23 : vector<2x16x32xf32>
    %25 = vector.broadcast %16 : vector<2x1x32xf32> to vector<2x16x32xf32>
    %26 = arith.mulf %24, %25 : vector<2x16x32xf32>
    %c0_20 = arith.constant 0 : index
    %c0_21 = arith.constant 0 : index
    %c0_22 = arith.constant 0 : index
    %27 = vector.load %arg7[%c0_20, %c0_21, %c0_22] : memref<2x1x32xf32, #tpu.memory_space<vmem>>, vector<2x1x32xf32>
    %28 = arith.mulf %13, %13 : vector<2x16x32xf32>
    %cst_23 = arith.constant dense<0.000000e+00> : vector<2x16xf32>
    %29 = vector.multi_reduction <add>, %28, %cst_23 [2] : vector<2x16x32xf32> to vector<2x16xf32>
    %30 = vector.shape_cast %29 : vector<2x16xf32> to vector<2x16x1xf32>
    %cst_24 = arith.constant 9.99999996E-13 : f32
    %31 = vector.broadcast %cst_24 : f32 to vector<2x16x1xf32>
    %32 = arith.maximumf %30, %31 : vector<2x16x1xf32>
    %33 = math.rsqrt %32 : vector<2x16x1xf32>
    %34 = vector.broadcast %33 : vector<2x16x1xf32> to vector<2x16x32xf32>
    %35 = arith.mulf %13, %34 : vector<2x16x32xf32>
    %36 = vector.broadcast %27 : vector<2x1x32xf32> to vector<2x16x32xf32>
    %37 = arith.mulf %35, %36 : vector<2x16x32xf32>
    %38 = vector.shape_cast %26 : vector<2x16x32xf32> to vector<4x8x32xf32>
    %39 = arith.truncf %38 : vector<4x8x32xf32> to vector<4x8x32xbf16>
    %40 = vector.shape_cast %37 : vector<2x16x32xf32> to vector<4x8x32xf32>
    %41 = arith.truncf %40 : vector<4x8x32xf32> to vector<4x8x32xbf16>
    %42 = vector.shape_cast %15 : vector<2x16x32xf32> to vector<4x8x32xf32>
    %43 = arith.truncf %42 : vector<4x8x32xf32> to vector<4x8x32xbf16>
    "tpu.trace_start"() <{level = 10 : i32, message = "gsd,gtd->gst"}> : () -> ()
    %cst_25 = arith.constant dense<0.000000e+00> : vector<4x8x8xf32>
    %44 = tpu.matmul %39, %41, %cst_25 {dimension_numbers = #tpu.dot_dimension_numbers<[2], [2], [1], [1], [0, 0, 0, 1, 1, 1], [0], [0]>} : vector<4x8x32xbf16>, vector<4x8x32xbf16>, vector<4x8x8xf32> -> vector<4x8x8xf32>
    "tpu.trace_stop"() : () -> ()
    %45 = tpu.iota {dimensions = array<i32: 0>} : vector<8x8xi32>
    %46 = tpu.iota {dimensions = array<i32: 1>} : vector<8x8xi32>
    %47 = arith.cmpi sge, %45, %46 : vector<8x8xi32>
    %48 = vector.shape_cast %47 : vector<8x8xi1> to vector<1x8x8xi1>
    %cst_26 = arith.constant -1.000000e+30 : f32
    %49 = vector.shape_cast %48 : vector<1x8x8xi1> to vector<1x8x8xi1>
    %50 = vector.broadcast %49 : vector<1x8x8xi1> to vector<4x8x8xi1>
    %51 = vector.broadcast %cst_26 : f32 to vector<4x8x8xf32>
    %52 = arith.select %50, %44, %51 : vector<4x8x8xi1>, vector<4x8x8xf32>
    %cst_27 = arith.constant dense<0xFF800000> : vector<4x8xf32>
    %53 = vector.multi_reduction <maximumf>, %52, %cst_27 [2] : vector<4x8x8xf32> to vector<4x8xf32>
    %54 = vector.shape_cast %53 : vector<4x8xf32> to vector<4x8x1xf32>
    %55 = vector.broadcast %54 : vector<4x8x1xf32> to vector<4x8x8xf32>
    %56 = arith.subf %52, %55 : vector<4x8x8xf32>
    %57 = math.exp %56 : vector<4x8x8xf32>
    %cst_28 = arith.constant dense<0.000000e+00> : vector<4x8xf32>
    %58 = vector.multi_reduction <add>, %57, %cst_28 [2] : vector<4x8x8xf32> to vector<4x8xf32>
    %59 = vector.shape_cast %58 : vector<4x8xf32> to vector<4x8x1xf32>
    %60 = tpu.reciprocal %59 {approx = true} : vector<4x8x1xf32> -> vector<4x8x1xf32>
    %61 = vector.broadcast %60 : vector<4x8x1xf32> to vector<4x8x8xf32>
    %62 = arith.mulf %57, %61 : vector<4x8x8xf32>
    %63 = arith.truncf %62 : vector<4x8x8xf32> to vector<4x8x8xbf16>
    "tpu.trace_start"() <{level = 10 : i32, message = "gst,gtd->gsd"}> : () -> ()
    %cst_29 = arith.constant dense<0.000000e+00> : vector<4x8x32xf32>
    %64 = tpu.matmul %63, %43, %cst_29 {dimension_numbers = #tpu.dot_dimension_numbers<[2], [1], [1], [2], [0, 0, 0, 1, 1, 2], [0], [0]>} : vector<4x8x8xbf16>, vector<4x8x32xbf16>, vector<4x8x32xf32> -> vector<4x8x32xf32>
    "tpu.trace_stop"() : () -> ()
    %65 = vector.shape_cast %64 : vector<4x8x32xf32> to vector<2x16x32xf32>
    %66 = arith.truncf %65 : vector<2x16x32xf32> to vector<2x16x32xbf16>
    %c0_30 = arith.constant 0 : index
    %c0_31 = arith.constant 0 : index
    %c0_32 = arith.constant 0 : index
    %67 = vector.load %arg5[%c0_30, %c0_31, %c0_32] : memref<2x32x32xbf16, #tpu.memory_space<vmem>>, vector<2x32x32xbf16>
    "tpu.trace_start"() <{level = 10 : i32, message = "hne,hed->hnd"}> : () -> ()
    %cst_33 = arith.constant dense<0.000000e+00> : vector<2x16x32xf32>
    %68 = tpu.matmul %66, %67, %cst_33 {dimension_numbers = #tpu.dot_dimension_numbers<[2], [1], [1], [2], [0, 0, 0, 1, 1, 2], [0], [0]>} : vector<2x16x32xbf16>, vector<2x32x32xbf16>, vector<2x16x32xf32> -> vector<2x16x32xf32>
    "tpu.trace_stop"() : () -> ()
    %cst_34 = arith.constant dense<0.000000e+00> : vector<16x32xf32>
    %69 = vector.multi_reduction <add>, %68, %cst_34 [0] : vector<2x16x32xf32> to vector<16x32xf32>
    %70 = vector.shape_cast %69 : vector<16x32xf32> to vector<2x8x32xf32>
    %c0_35 = arith.constant 0 : index
    %c0_36 = arith.constant 0 : index
    %c0_37 = arith.constant 0 : index
    %71 = vector.load %arg8[%c0_35, %c0_36, %c0_37] : memref<2x8x32xf32, #tpu.memory_space<vmem>>, vector<2x8x32xf32>
    tpu.vector_store %arg8[%c0_35, %c0_36, %c0_37], %70 {strides = array<i32>} : memref<2x8x32xf32, #tpu.memory_space<vmem>>, vector<2x8x32xf32>,
    return
  }
}

</mosaic_0001>

<bundles_post_ra>
// kernel: tpu_custom_call.1
= control target key start
LH: loop header
LB: loop body
LE: loop exit
PB: predicated region body
PF: predicated region fallthrough
CT: control target
= control target key end

     0   :  { %13 = vsyncpa [#allocation3], 0  ;;  %s1388_s0 = inlined_call_operand.hbm [shape: f32[2,8,32], index: 0, kind: input, shape index: {}]   ;;  %s1389_s1 = inlined_call_operand.hbm [shape: f32[8,32], index: 1, kind: input, shape index: {}]   ;;  %s1390_s2 = inlined_call_operand.hbm [shape: bf16[2,32,32], index: 2, kind: input, shape index: {}]   ;;  %s1391_s3 = inlined_call_operand.hbm [shape: bf16[2,32,32], index: 3, kind: input, shape index: {}]   ;;  %s1392_s4 = inlined_call_operand.hbm [shape: bf16[2,32,32], index: 4, kind: input, shape index: {}]   ;;  %s1393_s5 = inlined_call_operand.hbm [shape: bf16[2,32,32], index: 5, kind: input, shape index: {}]   ;;  %s1394_s6 = inlined_call_operand.vmem [shape: f32[2,1,32], index: 6, kind: input, shape index: {}]   ;;  %s1395_s7 = inlined_call_operand.vmem [shape: f32[2,1,32], index: 7, kind: input, shape index: {}]   ;;  %s1396_s8 = inlined_call_operand.hbm [shape: f32[2,8,32], index: 8, kind: output, shape index: {}]  }
   0x1   :  { %14 = vsyncpa [#allocation6], 0 }
   0x2   :  { %15 = vsyncpa [#allocation9], 0 }
   0x3   :  { %16 = vsyncpa [#allocation12], 0  ;;  %s36_s29 = sshll.u32 %s1389_s1, 4  ;;  %s37_s29 = int_to_ptr.hbm [resolvable:$true] %s36_s29 }
   0x4   :  { %17 = vsyncpa [#allocation4], 0  ;;  %s1127_s30 = smov [#allocation5]   ;;  %s59_s12 = sshll.u32 %s1391_s3, 4  ;;  %s60_s12 = int_to_ptr.hbm [resolvable:$true] %s59_s12 }
   0x5   :  { %s38_s9 = sshll.u32 %s1127_s30, 4  ;;  %s1128_s13 = smov [#allocation8]   ;;  %s39_s9 = int_to_ptr.vmem [resolvable:$true] %s38_s9 }
   0x6   :  { %41 = dma.hbm_to_vmem [thread:$0]  %s37_s29, 128, %s39_s9, [#allocation6]  }
   0x7   :  { %s61_s14 = sshll.u32 %s1128_s13, 4  ;;  %s22_s17 = sshll.u32 %s1388_s0, 4  ;;  %s62_s14 = int_to_ptr.vmem [resolvable:$true] %s61_s14  ;;  %s23_s17 = int_to_ptr.hbm [resolvable:$true] %s22_s17 }
   0x8   :  { %s1129_s1 = smov 64   ;;  %s1130_s18 = smov 4  }
   0x9   :  { %67 = dma.hbm_to_vmem [thread:$0]  %s60_s12, 512, %s62_s14, [#allocation9], %s1129_s1, %s1129_s1, %s1130_s18  }
   0xa   :  { %s1131_s19 = smov [#allocation2]   ;;  %s46_s23 = sshll.u32 %s1390_s2, 4  ;;  %s47_s23 = int_to_ptr.hbm [resolvable:$true] %s46_s23 }
   0xb   :  { %s24_s20 = sshll.u32 %s1131_s19, 4  ;;  %s1132_s3 = smov 128   ;;  %s25_s20 = int_to_ptr.vmem [resolvable:$true] %s24_s20 }
   0xc   :  { %s1133_s24 = smov 8   ;;  %s1134_s0 = smov [#allocation7]  }
   0xd   :  { %30 = dma.hbm_to_vmem [thread:$0]  %s23_s17, 256, %s25_s20, [#allocation3], %s1132_s3, %s1132_s3, %s1133_s24  }
   0xe   :  { %s48_s25 = sshll.u32 %s1134_s0, 4  ;;  %s72_s28 = sshll.u32 %s1392_s4, 4  ;;  %s49_s25 = int_to_ptr.vmem [resolvable:$true] %s48_s25  ;;  %s73_s28 = int_to_ptr.hbm [resolvable:$true] %s72_s28 }
   0xf   :  { %54 = dma.hbm_to_vmem [thread:$0]  %s47_s23, 512, %s49_s25, [#allocation6], %s1129_s1, %s1129_s1, %s1130_s18  }
  0x10   :  { %s85_s2 = sshll.u32 %s1393_s5, 4  ;;  %s1135_s9 = smov [#allocation10]   ;;  %s86_s2 = int_to_ptr.hbm [resolvable:$true] %s85_s2 }
  0x11   :  { %s74_s10 = sshll.u32 %s1135_s9, 4  ;;  %s1136_s11 = smov [#allocation11]   ;;  %s75_s10 = int_to_ptr.vmem [resolvable:$true] %s74_s10 }
  0x12   :  { %80 = dma.hbm_to_vmem [thread:$0]  %s73_s28, 512, %s75_s10, [#allocation9], %s1129_s1, %s1129_s1, %s1130_s18  }
  0x13   :  { %s87_s12 = sshll.u32 %s1136_s11, 4  ;;  %s88_s12 = int_to_ptr.vmem [resolvable:$true] %s87_s12 }
  0x14   :  { %93 = dma.hbm_to_vmem [thread:$0]  %s86_s2, 512, %s88_s12, [#allocation12], %s1129_s1, %s1129_s1, %s1130_s18  }
  0x15   :  { %1117 = dma.done.wait [#allocation3], 256  }
  0x16   :  { %1118 = vsyncadd [#allocation3], 4294967040 }
  0x17   :  { %1119 = dma.done.wait [#allocation6], 640  }
  0x18   :  { %1120 = vsyncadd [#allocation6], 4294966656 }
  0x19   :  { %1121 = dma.done.wait [#allocation9], 1024  }
  0x1a   :  { %1122 = vsyncadd [#allocation9], 4294966272 }
  0x1b   :  { %1123 = dma.done.wait [#allocation12], 512  }
  0x1c   :  { %1124 = vsyncadd [#allocation12], 4294966784  ;;  %v887_v0 = vld [vmem:[#allocation7 + $0x8] sm:$0xff]  ;;  %v893_v2 = vld [vmem:[#allocation8 + $0x18] sm:$0xff]  ;;  %vm155_vm0 = vcmask 261120   ;;  %s790_s20 = sshll.u32 %s1396_s8, 4  ;;  %s791_s20 = int_to_ptr.hbm [resolvable:$true] %s790_s20 }
  0x1d   :  { %v891_v1 = vld [vmem:[#allocation8 + $0x8] sm:$0xff]  ;;  %v886_v3 = vld [vmem:[#allocation7] sm:$0xff]  ;;  %165 = vmatpush.bf16.msra.mxu0 %v887_v0  ;;  %v124_v6 = vld [vmem:[#allocation2 + $0x8] sm:$0xff]  ;;  %251 = vmatpush.bf16.msra.mxu3 %v893_v2 }
  0x1e   :  { %v890_v4 = vld [vmem:[#allocation8] sm:$0xff]  ;;  %225 = vmatpush.bf16.msra.mxu2 %v891_v1  ;;  %v123_v5 = vld [vmem:[#allocation2] sm:$0xff]  ;;  %v125_v7 = vld [vmem:[#allocation5] sm:$0xff] }
  0x1f   :  { %v892_v8 = vld [vmem:[#allocation8 + $0x10] sm:$0xff]  ;;  %v126_v9 = vadd.f32 %v125_v7, %v123_v5  ;;  %v127_v10 = vadd.f32 %v125_v7, %v124_v6  ;;  %v889_v11 = vld [vmem:[#allocation7 + $0x18] sm:$0xff]  ;;  %v895_v42 = vld [vmem:[#allocation10 + $0x8] sm:$0xff] }
  0x20   :  { %191 = vmatpush.bf16.msra.mxu1 %v889_v11  ;;  %v888_v14 = vld [vmem:[#allocation7 + $0x10] sm:$0xff]  ;;  %v897_v43 = vld [vmem:[#allocation10 + $0x18] sm:$0xff]  ;;  %v894_v44 = vld [vmem:[#allocation10] sm:$0xff] }
  0x21   :  { %v128_v12 = vpack.c.bf16 %v126_v9, %v126_v9  ;;  %v129_v13 = vpack.c.bf16 %v127_v10, %v127_v10  ;;  %166 = vmatpush.bf16.msra.mxu0 %v886_v3  ;;  %252 = vmatpush.bf16.msra.mxu3 %v892_v8  ;;  %v896_v45 = vld [vmem:[#allocation10 + $0x10] sm:$0xff] }
  0x22   :  { %226 = vmatpush.bf16.msra.mxu2 %v890_v4 }
  0x23   :  { %v140_v15 = vunpack.c.l.b16 %v128_v12  ;;  %v141_v16 = vunpack.c.l.b16 %v129_v13 }
  0x24   :  { %192 = vmatpush.bf16.msra.mxu1 %v888_v14 }
  0x25   :  { %v142_v17 = vpack.c.b16 %v141_v16, %v140_v15  ;;  %285 = vmatpush.bf16.msrb.mxu0 %v895_v42  ;;  %v915_v42 = vld [vmem:[%s1395_s7 + $0x1] ss:$0 sm:$0xff] }
  0x27   :  { %814 = vmatmul.msk.bf16.vlgmr.msra.gmra.mxu0 %vm155_vm0, %v142_v17  ;;  %832 = vmatmul.msk.bf16.vlgmr.msra.gmra.mxu2 %vm155_vm0, %v142_v17 }
  0x28   :  { %841 = vmatmul.msk.bf16.vlgmr.msra.gmra.mxu3 %vm155_vm0, %v142_v17  ;;  %823 = vmatmul.msk.bf16.vlgmr.msra.gmra.mxu1 %vm155_vm0, %v142_v17 }
  0x29   :  { %311 = vmatpush.bf16.msrb.mxu1 %v897_v43  ;;  %286 = vmatpush.bf16.msrb.mxu0 %v894_v44 }
  0x2d   :  { %312 = vmatpush.bf16.msrb.mxu1 %v896_v45 }
  0x37   :  { %850 = vmatmul.msk.bf16.vlgmr.msrb.gmra.mxu0 %vm155_vm0, %v142_v17 }
  0x38   :  { %859 = vmatmul.msk.bf16.vlgmr.msrb.gmra.mxu1 %vm155_vm0, %v142_v17 }
  0xa4   :  { %v1208_v18 = vpop.f32.mrf.mxu0 }
  0xa5   :  { %v321_v19 = vmul.f32 %v1208_v18, %v1208_v18  ;;  %v1212_v20 = vpop.f32.mrf.mxu1 }
  0xa6   :  { %v323_v40 = vmul.f32 %v1212_v20, %v1212_v20 }
  0xa7   :  { %v325_v21 = vsel %vm155_vm0, %v321_v19, 0.0 }
  0xa8   :  { %326 = vadd.xlane.f32.xlu1 %v325_v21  ;;  %v331_v41 = vsel %vm155_vm0, %v323_v40, 0.0 }
  0xaa   :  { %v1215_v22 = vpop.f32.mrf.mxu2 }
  0xab   :  { %v1217_v23 = vpop.f32.mrf.mxu3  ;;  %v397_v24 = vmul.f32 %v1215_v22, %v1215_v22 }
  0xac   :  { %v1221_v25 = vpop.f32.mrf.mxu0  ;;  %v399_v26 = vmul.f32 %v1217_v23, %v1217_v23 }
  0xad   :  { %v322_v27 = vmul.f32 %v1221_v25, %v1221_v25  ;;  %v401_v28 = vsel %vm155_vm0, %v397_v24, 0.0  ;;  %v1229_v30 = vpop.f32.mrf.mxu1 }
  0xae   :  { %v407_v29 = vsel %vm155_vm0, %v399_v26, 0.0  ;;  %402 = vadd.xlane.f32.xlu0 %v401_v28  ;;  %v324_v32 = vmul.f32 %v1229_v30, %v1229_v30 }
  0xaf   :  { %408 = vadd.xlane.f32.xlu2 %v407_v29  ;;  %v328_v31 = vsel %vm155_vm0, %v322_v27, 0.0 }
  0xb0   :  { %329 = vadd.xlane.f32.xlu1 %v328_v31  ;;  %v334_v38 = vsel %vm155_vm0, %v324_v32, 0.0 }
  0xb2   :  { %v1234_v33 = vpop.f32.mrf.mxu2 }
  0xb3   :  { %v398_v34 = vmul.f32 %v1234_v33, %v1234_v33  ;;  %v1238_v35 = vpop.f32.mrf.mxu3 }
  0xb4   :  { %v400_v36 = vmul.f32 %v1238_v35, %v1238_v35 }
  0xb5   :  { %v404_v37 = vsel %vm155_vm0, %v398_v34, 0.0 }
  0xb6   :  { %v410_v39 = vsel %vm155_vm0, %v400_v36, 0.0  ;;  %405 = vadd.xlane.f32.xlu0 %v404_v37 }
  0xb7   :  { %411 = vadd.xlane.f32.xlu2 %v410_v39 }
  0xb8   :  { %335 = vadd.xlane.f32.xlu1 %v334_v38 }
  0xbe   :  { %332 = vadd.xlane.f32.xlu0 %v331_v41  ;;  %v914_v41 = vld [vmem:[%s1395_s7] ss:$0 sm:$0xff] }
 0x11b   :  { %v327_v46 = vpop.xlane.xlu1 %326 }
 0x11c   :  { %v337_v47 = vmax.f32 %v327_v46, 1e-12 }
 0x11e   :  { %917 = vrsqrt.f32 %v337_v47  ;;  %vm347_vm1 = vweird.f32 %v337_v47 }
 0x121   :  { %v403_v48 = vpop.xlane.xlu0 %402 }
 0x122   :  { %v409_v49 = vpop.xlane.xlu2 %408  ;;  %v413_v50 = vmax.f32 %v403_v48, 1e-12 }
 0x123   :  { %v415_v51 = vmax.f32 %v409_v49, 1e-12  ;;  %v330_v52 = vpop.xlane.xlu1 %329 }
 0x124   :  { %v1250_v53 = vpop.eup %917  ;;  %919 = vrsqrt.f32 %v413_v50  ;;  %v1252_v54 = vmax.f32 %v330_v52, 1e-12  ;;  %vm423_vm7 = vweird.f32 %v413_v50 }
 0x125   :  { %v342_v55 = vmul.f32 %v1250_v53, %v337_v47  ;;  %921 = vrsqrt.f32 %v415_v51  ;;  %vm348_vm2 = vweird.f32 %v1250_v53  ;;  %vm443_vm3 = vweird.f32 %v415_v51 }
 0x126   :  { %923 = vrsqrt.f32 %v1252_v54  ;;  %vm1273_vm5 = vmor %vm347_vm1, %vm348_vm2  ;;  %vm357_vm10 = vweird.f32 %v1252_v54 }
 0x127   :  { %v343_v56 = vmul.f32 %v1250_v53, %v342_v55 }
 0x129   :  { %v344_v57 = vmul.f32 0.5, %v343_v56  ;;  %v406_v58 = vpop.xlane.xlu0 %405 }
 0x12a   :  { %v920_v59 = vpop.eup %919  ;;  %v412_v60 = vpop.xlane.xlu2 %411  ;;  %v1257_v61 = vmax.f32 %v406_v58, 1e-12 }
 0x12b   :  { %v922_v62 = vpop.eup %921  ;;  %v418_v63 = vmul.f32 %v920_v59, %v413_v50  ;;  %v1259_v0 = vmax.f32 %v412_v60, 1e-12  ;;  %v336_v1 = vpop.xlane.xlu1 %335  ;;  %v345_v4 = vsub.f32 1.5, %v344_v57  ;;  %vm424_vm4 = vweird.f32 %v920_v59  ;;  %v916_v60 = vld [vmem:[%s1394_s6] ss:$0 sm:$0xff] }
 0x12c   :  { %v1261_v2 = vpop.eup %923  ;;  %v438_v3 = vmul.f32 %v922_v62, %v415_v51  ;;  %925 = vrsqrt.f32 %v1257_v61  ;;  %v1267_v8 = vmax.f32 %v336_v1, 1e-12  ;;  %vm444_vm6 = vweird.f32 %v922_v62  ;;  %vm1280_vm8 = vmor %vm423_vm7, %vm424_vm4 }
 0x12d   :  { %v419_v5 = vmul.f32 %v920_v59, %v418_v63  ;;  %v352_v6 = vmul.f32 %v1261_v2, %v1252_v54  ;;  %927 = vrsqrt.f32 %v1259_v0  ;;  %v346_v12 = vmul.f32 %v1250_v53, %v345_v4  ;;  %vm1289_vm9 = vmor %vm443_vm3, %vm444_vm6 }
 0x12e   :  { %v439_v7 = vmul.f32 %v922_v62, %v438_v3  ;;  %929 = vrsqrt.f32 %v1267_v8  ;;  %vm433_vm11 = vweird.f32 %v1257_v61  ;;  %vm358_vm12 = vweird.f32 %v1261_v2 }
 0x12f   :  { %v420_v9 = vmul.f32 0.5, %v419_v5  ;;  %v353_v10 = vmul.f32 %v1261_v2, %v352_v6  ;;  %v350_v31 = vsel %vm1273_vm5, %v1250_v53, %v346_v12  ;;  %vm453_vm13 = vweird.f32 %v1259_v0  ;;  %vm1329_vm4 = vmor %vm357_vm10, %vm358_vm12 }
 0x130   :  { %v440_v11 = vmul.f32 0.5, %v439_v7  ;;  %v381_v46 = vmul.f32 %v350_v31, %v1208_v18  ;;  %vm377_vm2 = vweird.f32 %v1267_v8  ;;  %vm622_vm10 = vcmask 1043456  }
 0x131   :  { %v421_v13 = vsub.f32 1.5, %v420_v9  ;;  %v333_v14 = vpop.xlane.xlu0 %332  ;;  %v354_v19 = vmul.f32 0.5, %v353_v10  ;;  %vm570_vm12 = vcmask 64512  }
 0x132   :  { %v926_v15 = vpop.eup %925  ;;  %v441_v17 = vsub.f32 1.5, %v440_v11  ;;  %v1277_v21 = vmax.f32 %v333_v14, 1e-12 }
 0x133   :  { %v422_v24 = vmul.f32 %v920_v59, %v421_v13  ;;  %v428_v26 = vmul.f32 %v926_v15, %v1257_v61  ;;  %v928_v27 = vpop.eup %927  ;;  %v355_v39 = vsub.f32 1.5, %v354_v19  ;;  %vm434_vm14 = vweird.f32 %v926_v15 }
 0x134   :  { %v442_v28 = vmul.f32 %v922_v62, %v441_v17  ;;  %931 = vrsqrt.f32 %v1277_v21  ;;  %v448_v34 = vmul.f32 %v928_v27, %v1259_v0  ;;  %v1295_v37 = vpop.eup %929  ;;  %vm454_vm15 = vweird.f32 %v928_v27  ;;  %vm435_vm1 = vmor %vm433_vm11, %vm434_vm14 }
 0x135   :  { %v429_v36 = vmul.f32 %v926_v15, %v428_v26  ;;  %v426_v40 = vsel %vm1280_vm8, %v920_v59, %v422_v24  ;;  %v372_v45 = vmul.f32 %v1295_v37, %v1267_v8  ;;  %v356_v53 = vmul.f32 %v1261_v2, %v355_v39  ;;  %vm455_vm5 = vmor %vm453_vm13, %vm454_vm15  ;;  %v913_v8 = vld [vmem:[%s1394_s6 + $0x1] ss:$0 sm:$0xff]  ;;  %s1137_s6 = smov [#allocation13]  }
 0x136   :  { %v446_v38 = vsel %vm1289_vm9, %v922_v62, %v442_v28  ;;  %v449_v43 = vmul.f32 %v928_v27, %v448_v34  ;;  %v457_v47 = vmul.f32 %v426_v40, %v1215_v22  ;;  %vm378_vm3 = vweird.f32 %v1295_v37  ;;  %v288_v34 = vpop.f32.mrf.mxu0  ;;  %s788_s1 = sshll.u32 %s1137_s6, 4  ;;  %s789_s1 = int_to_ptr.vmem [resolvable:$true] %s788_s1 }
 0x137   :  { %v430_v44 = vmul.f32 0.5, %v429_v36  ;;  %v459_v48 = vmul.f32 %v446_v38, %v1217_v23  ;;  %v373_v51 = vmul.f32 %v1295_v37, %v372_v45  ;;  %v360_v54 = vsel %vm1329_vm4, %v1261_v2, %v356_v53  ;;  %vm379_vm6 = vmor %vm377_vm2, %vm378_vm3 }
 0x138   :  { %v450_v49 = vmul.f32 0.5, %v449_v43  ;;  %v467_v55 = vmul.f32 %v914_v41, %v457_v47  ;;  %v391_v0 = vmul.f32 %v916_v60, %v381_v46  ;;  %v382_v2 = vmul.f32 %v360_v54, %v1221_v25 }
 0x139   :  { %v431_v50 = vsub.f32 1.5, %v430_v44  ;;  %v469_v56 = vmul.f32 %v915_v42, %v459_v48  ;;  %v374_v18 = vmul.f32 0.5, %v373_v51  ;;  %vm367_vm8 = vweird.f32 %v1277_v21 }
 0x13a   :  { %v932_v52 = vpop.eup %931  ;;  %v451_v57 = vsub.f32 1.5, %v450_v49  ;;  %v475_v22 = vpack.c.bf16 %v467_v55, %v467_v55  ;;  %v471_v19 = vpack.c.bf16 %v391_v0, %v391_v0  ;;  %v479_v36 = vpack.c.bf16 %v288_v34, %v288_v34 }
 0x13b   :  { %v432_v58 = vmul.f32 %v926_v15, %v431_v50  ;;  %v362_v59 = vmul.f32 %v932_v52, %v1277_v21  ;;  %v477_v23 = vpack.c.bf16 %v469_v56, %v469_v56  ;;  %v375_v63 = vsub.f32 1.5, %v374_v18 }
 0x13c   :  { %v452_v61 = vmul.f32 %v928_v27, %v451_v57  ;;  %v487_v4 = vsel %vm155_vm0, %v475_v22, 0  ;;  %vm368_vm7 = vweird.f32 %v932_v52  ;;  %v392_v21 = vmul.f32 %v916_v60, %v382_v2 }
 0x13d   :  { %v363_v1 = vmul.f32 %v932_v52, %v362_v59  ;;  %v436_v3 = vsel %vm435_vm1, %v926_v15, %v432_v58  ;;  %v525_v5 = vsel %vm155_vm0, %v477_v23, 0  ;;  %v376_v9 = vmul.f32 %v1295_v37, %v375_v63  ;;  %496 = vmatpush.bf16.xpose.msrb.mxu2 %v487_v4  ;;  %vm369_vm9 = vmor %vm367_vm8, %vm368_vm7 }
 0x13e   :  { %v458_v6 = vmul.f32 %v436_v3, %v1234_v33  ;;  %v456_v7 = vsel %vm455_vm5, %v928_v27, %v452_v61  ;;  %534 = vmatpush.bf16.xpose.msra.mxu0 %v525_v5  ;;  %v472_v32 = vpack.c.bf16 %v392_v21, %v392_v21  ;;  %v624_v38 = vsel %vm622_vm10, %v479_v36, 0  ;;  %v290_v40 = vpop.f32.mrf.mxu0 }
 0x13f   :  { %v364_v10 = vmul.f32 0.5, %v363_v1  ;;  %v460_v12 = vmul.f32 %v456_v7, %v1238_v35  ;;  %v380_v33 = vsel %vm379_vm6, %v1295_v37, %v376_v9  ;;  %v559_v46 = vlaneseq }
 0x140   :  { %v468_v11 = vmul.f32 %v914_v41, %v458_v6  ;;  %v384_v17 = vmul.f32 %v380_v33, %v1229_v30 }
 0x141   :  { %v365_v13 = vsub.f32 1.5, %v364_v10  ;;  %v470_v15 = vmul.f32 %v915_v42, %v460_v12  ;;  %v480_v42 = vpack.c.bf16 %v290_v40, %v290_v40  ;;  %v560_v47 = vshrl.u32 %v559_v46, 7  ;;  %v898_v40 = vld [vmem:[#allocation11] sm:$0xff] }
 0x142   :  { %v476_v14 = vpack.c.bf16 %v468_v11, %v468_v11  ;;  %v394_v28 = vmul.f32 %v913_v8, %v384_v17  ;;  %v562_v48 = vand.u32 127, %v559_v46 }
 0x143   :  { %v366_v16 = vmul.f32 %v932_v52, %v365_v13  ;;  %v478_v24 = vpack.c.bf16 %v470_v15, %v470_v15  ;;  %v643_v44 = vsel %vm622_vm10, %v480_v42, 0 }
 0x144   :  { %v506_v35 = vsel %vm155_vm0, %v476_v14, 0  ;;  %860 = vmatmul.msk.bf16.vlgmr.msrb.gmra.mxu2 %vm155_vm0, %v471_v19  ;;  %v474_v30 = vpack.c.bf16 %v394_v28, %v394_v28  ;;  %vm563_vm11 = vcmp.ge.s32.totalorder %v560_v47, %v562_v48 }
 0x145   :  { %v370_v26 = vsel %vm369_vm9, %v932_v52, %v366_v16  ;;  %515 = vmatpush.bf16.xpose.msrb.mxu3 %v506_v35  ;;  %v544_v27 = vsel %vm155_vm0, %v478_v24, 0  ;;  %633 = vmatpush.bf16.msra.mxu2 %v624_v38  ;;  %v900_v38 = vld [vmem:[#allocation11 + $0x10] sm:$0xff] }
 0x146   :  { %v383_v25 = vmul.f32 %v370_v26, %v1212_v20  ;;  %553 = vmatpush.bf16.xpose.msra.mxu1 %v544_v27  ;;  %v314_v20 = vpop.f32.mrf.mxu1 }
 0x147   :  { %v481_v37 = vpack.c.bf16 %v314_v20, %v314_v20 }
 0x148   :  { %v393_v29 = vmul.f32 %v913_v8, %v383_v25 }
 0x149   :  { %v662_v39 = vsel %vm622_vm10, %v481_v37, 0  ;;  %v901_v37 = vld [vmem:[#allocation11 + $0x18] sm:$0xff] }
 0x14a   :  { %v473_v31 = vpack.c.bf16 %v393_v29, %v393_v29  ;;  %671 = vmatpush.bf16.msrb.mxu0 %v662_v39  ;;  %v899_v39 = vld [vmem:[#allocation11 + $0x8] sm:$0xff] }
 0x14b   :  { %734 = vmatpush.bf16.msrb.mxu2 %v899_v39 }
 0x14c   :  { %861 = vmatmul.msk.bf16.vlgmr.msrb.gmra.mxu3 %vm155_vm0, %v472_v32  ;;  %862 = vmatmul.msk.bf16.vlgmr.msra.gmra.mxu0 %vm155_vm0, %v473_v31 }
 0x14d   :  { %863 = vmatmul.msk.bf16.vlgmr.msra.gmra.mxu1 %vm155_vm0, %v474_v30  ;;  %652 = vmatpush.bf16.msra.mxu3 %v643_v44 }
 0x14e   :  { %v316_v41 = vpop.f32.mrf.mxu1 }
 0x14f   :  { %v482_v43 = vpack.c.bf16 %v316_v41, %v316_v41  ;;  %735 = vmatpush.bf16.msrb.mxu2 %v898_v40 }
 0x151   :  { %v681_v45 = vsel %vm622_vm10, %v482_v43, 0  ;;  %768 = vmatpush.bf16.msrb.mxu3 %v901_v37 }
 0x152   :  { %690 = vmatpush.bf16.msrb.mxu1 %v681_v45 }
 0x155   :  { %769 = vmatpush.bf16.msrb.mxu3 %v900_v38 }
 0x1c7   :  { %v498_v49 = vpop.f32.mrf.mxu2 }
 0x1c8   :  { %v566_v51 = vsel %vm563_vm11, %v498_v49, -1e+30 }
 0x1c9   :  { %v536_v50 = vpop.f32.mrf.mxu0  ;;  %v571_v55 = vsel %vm570_vm12, %v566_v51, -inf }
 0x1ca   :  { %v568_v52 = vsel %vm563_vm11, %v536_v50, -1e+30  ;;  %v555_v53 = vpop.f32.mrf.mxu1  ;;  %572 = vmax.xlane.f32.xlu2 %v571_v55 }
 0x1cb   :  { %v577_v56 = vsel %vm570_vm12, %v568_v52, -inf  ;;  %v569_v58 = vsel %vm563_vm11, %v555_v53, -1e+30 }
 0x1cc   :  { %578 = vmax.xlane.f32.xlu1 %v577_v56  ;;  %v580_v62 = vsel %vm570_vm12, %v569_v58, -inf }
 0x1cf   :  { %v517_v57 = vpop.f32.mrf.mxu3  ;;  %v500_v59 = vpop.f32.mrf.mxu2 }
 0x1d0   :  { %v567_v18 = vsel %vm563_vm11, %v517_v57, -1e+30 }
 0x1d1   :  { %v538_v22 = vpop.f32.mrf.mxu0  ;;  %v574_v23 = vsel %vm570_vm12, %v567_v18, -inf }
 0x1d2   :  { %575 = vmax.xlane.f32.xlu0 %v574_v23  ;;  %v557_v60 = vpop.f32.mrf.mxu1  ;;  %581 = vmax.xlane.f32.xlu2 %v580_v62 }
 0x1d7   :  { %v519_v61 = vpop.f32.mrf.mxu3 }
 0x23d   :  { %v573_v63 = vpop.xlane.xlu2 %572 }
 0x23e   :  { %v583_v3 = vsub.f32 %v566_v51, %v573_v63 }
 0x23f   :  { %v579_v1 = vpop.xlane.xlu1 %578 }
 0x240   :  { %v585_v4 = vsub.f32 %v568_v52, %v579_v1  ;;  %v587_v5 = vmul.f32 1.442695, %v583_v3 }
 0x242   :  { %v591_v6 = vmul.f32 1.442695, %v585_v4  ;;  %933 = vpow2.f32 %v587_v5 }
 0x244   :  { %935 = vpow2.f32 %v591_v6 }
 0x245   :  { %v576_v54 = vpop.xlane.xlu0 %575  ;;  %v582_v9 = vpop.xlane.xlu2 %581 }
 0x246   :  { %v584_v7 = vsub.f32 %v567_v18, %v576_v54  ;;  %v586_v0 = vsub.f32 %v569_v58, %v582_v9 }
 0x248   :  { %v589_v10 = vmul.f32 1.442695, %v584_v7  ;;  %v934_v11 = vpop.eup %933  ;;  %v593_v12 = vmul.f32 1.442695, %v586_v0 }
 0x249   :  { %v595_v13 = vsel %vm570_vm12, %v934_v11, 0.0 }
 0x24a   :  { %937 = vpow2.f32 %v589_v10  ;;  %v936_v33 = vpop.eup %935  ;;  %596 = vadd.xlane.f32.xlu0 %v595_v13 }
 0x24b   :  { %939 = vpow2.f32 %v593_v12  ;;  %v601_v2 = vsel %vm570_vm12, %v936_v33, 0.0 }
 0x24c   :  { %602 = vadd.xlane.f32.xlu2 %v601_v2 }
 0x250   :  { %v938_v14 = vpop.eup %937 }
 0x251   :  { %v598_v15 = vsel %vm570_vm12, %v938_v14, 0.0  ;;  %v940_v16 = vpop.eup %939 }
 0x252   :  { %599 = vadd.xlane.f32.xlu1 %v598_v15  ;;  %v604_v8 = vsel %vm570_vm12, %v940_v16, 0.0 }
 0x253   :  { %605 = vadd.xlane.f32.xlu0 %v604_v8 }
 0x2bd   :  { %v597_v17 = vpop.xlane.xlu0 %596 }
 0x2be   :  { %941 = vrcp.f32 %v597_v17 }
 0x2bf   :  { %v603_v19 = vpop.xlane.xlu2 %602 }
 0x2c0   :  { %943 = vrcp.f32 %v603_v19 }
 0x2c4   :  { %v942_v24 = vpop.eup %941 }
 0x2c5   :  { %v600_v35 = vpop.xlane.xlu1 %599  ;;  %v611_v25 = vmul.f32 %v942_v24, %v934_v11 }
 0x2c6   :  { %945 = vrcp.f32 %v600_v35  ;;  %v944_v26 = vpop.eup %943  ;;  %v606_v27 = vpop.xlane.xlu0 %605 }
 0x2c7   :  { %v613_v21 = vmul.f32 %v944_v26, %v936_v33  ;;  %947 = vrcp.f32 %v606_v27  ;;  %v615_v28 = vpack.c.bf16 %v611_v25, %v611_v25 }
 0x2c9   :  { %v617_v29 = vpack.c.bf16 %v613_v21, %v613_v21  ;;  %864 = vmatmul.msk.bf16.vlgmr.msra.gmra.mxu2 %vm570_vm12, %v615_v28 }
 0x2cb   :  { %866 = vmatmul.msk.bf16.vlgmr.msrb.gmra.mxu0 %vm570_vm12, %v617_v29 }
 0x2cc   :  { %v946_v31 = vpop.eup %945 }
 0x2cd   :  { %v612_v32 = vmul.f32 %v946_v31, %v938_v14  ;;  %v948_v30 = vpop.eup %947 }
 0x2ce   :  { %v614_v34 = vmul.f32 %v948_v30, %v940_v16 }
 0x2cf   :  { %v616_v20 = vpack.c.bf16 %v612_v32, %v612_v32 }
 0x2d0   :  { %v618_v36 = vpack.c.bf16 %v614_v34, %v614_v34 }
 0x2d1   :  { %865 = vmatmul.msk.bf16.vlgmr.msra.gmra.mxu3 %vm570_vm12, %v616_v20 }
 0x2d2   :  { %867 = vmatmul.msk.bf16.vlgmr.msrb.gmra.mxu1 %vm570_vm12, %v618_v36 }
 0x348   :  { %v673_v41 = vpop.f32.mrf.mxu0 }
 0x349   :  { %v698_v43 = vpack.c.bf16 %v673_v41, %v673_v41 }
 0x34b   :  { %v744_v47 = vunpack.c.l.b16 %v698_v43 }
 0x34c   :  { %v635_v42 = vpop.f32.mrf.mxu2 }
 0x34d   :  { %v696_v48 = vpack.c.bf16 %v635_v42, %v635_v42 }
 0x34f   :  { %v692_v44 = vpop.f32.mrf.mxu1  ;;  %v710_v55 = vunpack.c.l.b16 %v696_v48 }
 0x350   :  { %v699_v45 = vpack.c.bf16 %v692_v44, %v692_v44  ;;  %v675_v46 = vpop.f32.mrf.mxu0 }
 0x352   :  { %v745_v49 = vunpack.c.l.b16 %v699_v45 }
 0x354   :  { %v654_v50 = vpop.f32.mrf.mxu3  ;;  %v746_v51 = vpack.c.b16 %v745_v49, %v744_v47  ;;  %v637_v53 = vpop.f32.mrf.mxu2 }
 0x355   :  { %v697_v52 = vpack.c.bf16 %v654_v50, %v654_v50 }
 0x356   :  { %885 = vmatmul.msk.bf16.vlgmr.msrb.gmra.mxu3 %vm155_vm0, %v746_v51 }
 0x357   :  { %v711_v56 = vunpack.c.l.b16 %v697_v52  ;;  %v694_v57 = vpop.f32.mrf.mxu1 }
 0x359   :  { %v712_v58 = vpack.c.b16 %v711_v56, %v710_v55 }
 0x35b   :  { %876 = vmatmul.msk.bf16.vlgmr.msrb.gmra.mxu2 %vm155_vm0, %v712_v58 }
 0x35c   :  { %v656_v18 = vpop.f32.mrf.mxu3 }
 0x3d9   :  { %v771_v59 = vpop.f32.mrf.mxu3 }
 0x3da   :  { %v777_v23 = vsel %vm155_vm0, %v771_v59, 0.0 }
 0x3de   :  { %v737_v22 = vpop.f32.mrf.mxu2 }
 0x3df   :  { %v776_v60 = vsel %vm155_vm0, %v737_v22, 0.0 }
 0x3e0   :  { %v778_v62 = vadd.f32 %v777_v23, %v776_v60 }
 0x3e1   :  { %v773_v61 = vpop.f32.mrf.mxu3 }
 0x3e2   :  { %782 = vst.msk [vmem:[#allocation13] sm:$0xff] %vm155_vm0, %v778_v62  ;;  %v780_v1 = vsel %vm155_vm0, %v773_v61, 0.0 }
 0x3e6   :  { %v739_v63 = vpop.f32.mrf.mxu2 }
 0x3e7   :  { %v779_v3 = vsel %vm155_vm0, %v739_v63, 0.0 }
 0x3e8   :  { %v781_v4 = vadd.f32 %v780_v1, %v779_v3 }
 0x3ea   :  { %783 = vst.msk [vmem:[#allocation13 + $0x8] sm:$0xff] %vm155_vm0, %v781_v4 }
 0x3eb   :  { %796 = dma.vmem_to_hbm [thread:$0]  %s789_s1, 256, %s791_s20, [#allocation4], %s1132_s3, %s1132_s3, %s1133_s24  }
 0x3ec   :  { %1125 = dma.done.wait [#allocation4], 256  }
 0x3ed   :  { %1126 = vsyncadd [#allocation4], 4294967040 }
 0x3ee   :  { %801 = vsyncpa [#allocation3], 1 }
 0x3ef   :  { %802 = vsyncpa [#allocation6], 1 }
 0x3f0   :  { %803 = vsyncpa [#allocation9], 1 }
 0x3f1   :  { %804 = vsyncpa [#allocation12], 1 }
 0x3f2   :  { %805 = vsyncpa [#allocation4], 1 }

</bundles_post_ra>
